<compile_context>
chip_gen: v7x
topology: tpu7x:2x2x1
jax: 0.10.0
libtpu: 0.0.40
codegen_flags: <defaults>
</compile_context>

<pallas_src>
import functools

import jax
import jax.numpy as jnp
from jax.experimental import pallas as pl
from jax.experimental.pallas import tpu as pltpu

LANE = 128
SUBLANE = 8


def _round_up(x, m):
    return (x + m - 1) // m * m


def _pad2d(x, rows, cols):
    r, c = x.shape
    if r == rows and c == cols:
        return x
    return jnp.zeros((rows, cols), x.dtype).at[:r, :c].set(x)


# --------------------------------------------------------------------------
# Kernel
# --------------------------------------------------------------------------
def _mlp_decoder_kernel(dims, z_ref, w1_ref, w2_ref, w3_ref, b_ref, out_ref):
    d_h1_p, d_h2_p, out_p = dims
    b_all = b_ref[...]  # (3, max_p) f32, resident; rows = (b1, b2, b3)

    # Layer 1: Linear + ReLU (MXU matmul, f32 accumulation, f32 epilogue)
    h = jnp.dot(z_ref[...], w1_ref[...], preferred_element_type=jnp.float32)
    h = jnp.maximum(h + b_all[0:1, :d_h1_p], 0.0)
    # Layer 2: Linear + ReLU
    h = jnp.dot(h.astype(w2_ref.dtype), w2_ref[...],
                preferred_element_type=jnp.float32)
    h = jnp.maximum(h + b_all[1:2, :d_h2_p], 0.0)
    # Output layer: Linear (no activation)
    y = jnp.dot(h.astype(w3_ref.dtype), w3_ref[...],
                preferred_element_type=jnp.float32)
    y = y + b_all[2:3, :out_p]
    out_ref[...] = y.astype(out_ref.dtype)


# --------------------------------------------------------------------------
# One-time parameter preparation (hoisted out of the forward hot path)
# --------------------------------------------------------------------------
def prepare_decoder_params(w1, b1, w2, b2, w3, b3, *, use_bf16=True):
    """Pad feature axes to multiples of 128 and cast weights to the MXU dtype.

    Params are in [in, out] layout (= W_pt.T), so y = x @ W + b matches
    nn.Linear.  Zero padding is exact: ReLU(0)=0 and zero rows/cols are inert.
    """
    d_in = w1.shape[0]
    d_h1, d_h2, out_dim = w1.shape[1], w2.shape[1], w3.shape[1]
    d_h1_p = _round_up(d_h1, LANE)
    d_h2_p = _round_up(d_h2, LANE)
    out_p = _round_up(out_dim, LANE)
    mm_dtype = jnp.bfloat16 if use_bf16 else jnp.float32

    w1_p = _pad2d(w1, d_in, d_h1_p).astype(mm_dtype)
    w2_p = _pad2d(w2, d_h1_p, d_h2_p).astype(mm_dtype)
    w3_p = _pad2d(w3, d_h2_p, out_p).astype(mm_dtype)

    max_p = max(d_h1_p, d_h2_p, out_p)
    b_all = jnp.zeros((3, max_p), jnp.float32)
    b_all = b_all.at[0, :d_h1].set(b1.reshape(-1).astype(jnp.float32))
    b_all = b_all.at[1, :d_h2].set(b2.reshape(-1).astype(jnp.float32))
    b_all = b_all.at[2, :out_dim].set(b3.reshape(-1).astype(jnp.float32))

    meta = dict(d_in=d_in, d_h1_p=d_h1_p, d_h2_p=d_h2_p, out_p=out_p,
                out_dim=out_dim, mm_dtype=mm_dtype)
    return (w1_p, w2_p, w3_p, b_all), meta


# --------------------------------------------------------------------------
# Forward (hot path)
# --------------------------------------------------------------------------
def mlp_decoder_forward(z, params, meta, *, block_b=1024, out_dtype=None,
                        return_padded=False):
    """z: [B, d_input] -> [B, output_dim] (or padded slab if return_padded)."""
    w1_p, w2_p, w3_p, b_all = params
    B, d_in = z.shape
    assert d_in == meta["d_in"]
    d_h1_p, d_h2_p, out_p = meta["d_h1_p"], meta["d_h2_p"], meta["out_p"]
    out_dim = meta["out_dim"]
    mm_dtype = meta["mm_dtype"]
    if out_dtype is None:
        out_dtype = (jnp.bfloat16 if jnp.dtype(mm_dtype) == jnp.dtype(jnp.bfloat16)
                     else jnp.float32)

    # --- padding-aware batch tile selection ---
    n_tiles = pl.cdiv(B, block_b)
    if B >= 2 * SUBLANE:
        n_tiles = max(n_tiles, 2)           # give v7x's 2nd TC work
    tb = _round_up(pl.cdiv(B, n_tiles), SUBLANE)
    b_pad = _round_up(B, tb)
    grid = (b_pad // tb,)

    z_p = _pad2d(z, b_pad, d_in).astype(mm_dtype)

    in_item = jnp.dtype(mm_dtype).itemsize
    out_item = jnp.dtype(out_dtype).itemsize

    # --- advisory cost estimate & explicit VMEM budget ---
    flops = 2 * b_pad * (d_in * d_h1_p + d_h1_p * d_h2_p + d_h2_p * out_p)
    bytes_accessed = (b_pad * d_in * in_item
                      + (w1_p.size + w2_p.size + w3_p.size) * in_item
                      + b_all.size * 4
                      + b_pad * out_p * out_item)
    weight_bytes = (w1_p.size + w2_p.size + w3_p.size) * in_item + b_all.size * 4
    tile_bytes = 2 * tb * d_in * in_item + 2 * tb * out_p * out_item  # dbl-buffered
    scratch_bytes = 2 * tb * max(d_h1_p, d_h2_p, out_p) * 4           # f32 interm.
    vmem_limit = int(min(64 * 2**20,
                         max(16 * 2**20,
                             2 * (weight_bytes + tile_bytes + scratch_bytes))))

    def resident(shape):
        # Constant block index across the grid -> DMA'd once, stays in VMEM.
        return pl.BlockSpec(shape, lambda i: (0, 0))

    kernel = functools.partial(_mlp_decoder_kernel, (d_h1_p, d_h2_p, out_p))

    out_padded = pl.pallas_call(
        kernel,
        out_shape=jax.ShapeDtypeStruct((b_pad, out_p), out_dtype),
        grid=grid,
        in_specs=[
            pl.BlockSpec((tb, d_in), lambda i: (i, 0)),
            resident(w1_p.shape),
            resident(w2_p.shape),
            resident(w3_p.shape),
            resident(b_all.shape),
        ],
        out_specs=pl.BlockSpec((tb, out_p), lambda i: (i, 0)),
        compiler_params=pltpu.CompilerParams(
            dimension_semantics=("parallel",),
            vmem_limit_bytes=vmem_limit),
        cost_estimate=pl.CostEstimate(
            flops=flops, transcendentals=0, bytes_accessed=bytes_accessed),
    )(z_p, w1_p, w2_p, w3_p, b_all)

    if return_padded:
        # Lane-dense [b_pad, out_p] slab; consumer slices/masks lazily (avoids
        # an extra HBM round-trip on this writeback-bound kernel).
        return out_padded
    return out_padded[:B, :out_dim]


def mlp_decoder_pallas(z, w1, b1, w2, b2, w3, b3, *, block_b=1024,
                       use_bf16=True, out_dtype=None, return_padded=False):
    """Convenience wrapper: prepare params then run (use prepare_* + forward
    directly in real code so the preparation stays out of the hot path)."""
    params, meta = prepare_decoder_params(w1, b1, w2, b2, w3, b3,
                                          use_bf16=use_bf16)
    return mlp_decoder_forward(z, params, meta, block_b=block_b,
                               out_dtype=out_dtype, return_padded=return_padded)


# --------------------------------------------------------------------------
# Reference & test harness
# --------------------------------------------------------------------------
def _init_linear(key, fan_in, fan_out):
    """PyTorch nn.Linear-style uniform(+-1/sqrt(fan_in)) init; weight returned
    already transposed to [in, out] so y = x @ W + b matches nn.Linear."""
    kw, kb = jax.random.split(key)
    bound = 1.0 / jnp.sqrt(jnp.float32(fan_in))
    w_pt = jax.random.uniform(kw, (fan_out, fan_in), jnp.float32, -bound, bound)
    b = jax.random.uniform(kb, (1, fan_out), jnp.float32, -bound, bound)
    return w_pt.T, b


def _reference(z, w1, b1, w2, b2, w3, b3, use_bf16):
    mm = jnp.bfloat16 if use_bf16 else jnp.float32
    h = jnp.dot(z.astype(mm), w1.astype(mm),
                preferred_element_type=jnp.float32) + b1
    h = jnp.maximum(h, 0.0)
    h = jnp.dot(h.astype(mm), w2.astype(mm),
                preferred_element_type=jnp.float32) + b2
    h = jnp.maximum(h, 0.0)
    return jnp.dot(h.astype(mm), w3.astype(mm),
                   preferred_element_type=jnp.float32) + b3


if __name__ == "__main__":
    # Small, module-consistent shapes.
    data_layer_layout = [2, 16, 1]  # target INR: 2 -> 16 -> 1
    output_dim = sum((data_layer_layout[i] + 1) * data_layer_layout[i + 1]
                     for i in range(len(data_layer_layout) - 1))  # = 65
    d_input = 32          # latent dim produced by the ScaleGMN encoder
    d_hidden = [64, 64]   # decoder_args['d_hidden']
    B = 2

    key = jax.random.PRNGKey(0)
    kz, k1, k2, k3, kz2 = jax.random.split(key, 5)

    # Latent embedding z = ScaleGMN(x)  (encoder not translated, see TODO above).
    z = jax.random.normal(kz, (B, d_input), jnp.float32)

    w1, b1 = _init_linear(k1, d_input, d_hidden[0])
    w2, b2 = _init_linear(k2, d_hidden[0], d_hidden[1])
    w3, b3 = _init_linear(k3, d_hidden[1], output_dim)

    # ---- 1) Exact-semantics check: f32 path vs f32 reference ----
    params_f32, meta_f32 = prepare_decoder_params(w1, b1, w2, b2, w3, b3,
                                                  use_bf16=False)
    fwd_f32 = jax.jit(lambda zz: mlp_decoder_forward(
        zz, params_f32, meta_f32, block_b=1024, out_dtype=jnp.float32))
    out_f32 = jax.block_until_ready(fwd_f32(z))
    ref_f32 = _reference(z, w1, b1, w2, b2, w3, b3, use_bf16=False)
    assert out_f32.shape == (B, output_dim)
    assert jnp.allclose(out_f32, ref_f32, atol=1e-5, rtol=1e-5), \
        "f32 kernel mismatch vs reference"

    # ---- 2) Fast path: bf16 MXU inputs + bf16 output, params prepped once ----
    params_bf16, meta_bf16 = prepare_decoder_params(w1, b1, w2, b2, w3, b3,
                                                    use_bf16=True)
    fwd_bf16 = jax.jit(lambda zz: mlp_decoder_forward(
        zz, params_bf16, meta_bf16, block_b=1024))
    out_bf16 = jax.block_until_ready(fwd_bf16(z))
    ref_bf16 = _reference(z, w1, b1, w2, b2, w3, b3, use_bf16=True)
    assert out_bf16.shape == (B, output_dim)
    assert out_bf16.dtype == jnp.bfloat16
    assert jnp.allclose(out_bf16.astype(jnp.float32), ref_bf16,
                        atol=2e-2, rtol=2e-2), \
        "bf16 kernel mismatch vs bf16 reference"
    assert jnp.allclose(out_bf16.astype(jnp.float32), ref_f32,
                        atol=5e-2, rtol=5e-2), \
        "bf16 kernel drifted too far from f32 semantics"

    # ---- 3) Multi-tile path (grid >= 2, padded batch rows) + padded output ----
    B2 = 20
    z2 = jax.random.normal(kz2, (B2, d_input), jnp.float32)
    out2_padded = jax.block_until_ready(mlp_decoder_forward(
        z2, params_f32, meta_f32, block_b=1024, out_dtype=jnp.float32,
        return_padded=True))
    ref2 = _reference(z2, w1, b1, w2, b2, w3, b3, use_bf16=False)
    assert out2_padded.shape[1] == 128 and out2_padded.shape[0] >= B2
    assert jnp.allclose(out2_padded[:B2, :output_dim], ref2,
                        atol=1e-5, rtol=1e-5), \
        "multi-tile f32 kernel mismatch vs reference"

    print("KERNEL_OK")
</pallas_src>

<mosaic_0001>
module attributes {stable_mosaic.version = 11 : i64} {
  func.func @_mlp_decoder_kernel(%arg0: i32, %arg1: memref<8x32xf32, #tpu.memory_space<vmem>>, %arg2: memref<32x128xf32, #tpu.memory_space<vmem>>, %arg3: memref<128x128xf32, #tpu.memory_space<vmem>>, %arg4: memref<128x128xf32, #tpu.memory_space<vmem>>, %arg5: memref<3x128xf32, #tpu.memory_space<vmem>>, %arg6: memref<8x128xf32, #tpu.memory_space<vmem>>) attributes {dimension_semantics = [#tpu.dimension_semantics<parallel>], iteration_bounds = array<i64: 1>, scalar_prefetch = 0 : i64, scratch_operands = 0 : i64, tpu.core_type = #tpu.core_type<tc>, window_params = [{transform_indices = @transform_0, window_bounds = array<i64: 8, 32>}, {pipeline_mode = #tpu.pipeline_mode<synchronous>, transform_indices = @transform_1, window_bounds = array<i64: 32, 128>}, {pipeline_mode = #tpu.pipeline_mode<synchronous>, transform_indices = @transform_2, window_bounds = array<i64: 128, 128>}, {pipeline_mode = #tpu.pipeline_mode<synchronous>, transform_indices = @transform_3, window_bounds = array<i64: 128, 128>}, {pipeline_mode = #tpu.pipeline_mode<synchronous>, transform_indices = @transform_4, window_bounds = array<i64: 3, 128>}, {transform_indices = @transform_5, window_bounds = array<i64: 8, 128>}]} {
    %c0 = arith.constant 0 : index
    %c0_0 = arith.constant 0 : index
    %0 = vector.load %arg5[%c0, %c0_0] : memref<3x128xf32, #tpu.memory_space<vmem>>, vector<3x128xf32>
    %c0_1 = arith.constant 0 : index
    %c0_2 = arith.constant 0 : index
    %1 = vector.load %arg1[%c0_1, %c0_2] : memref<8x32xf32, #tpu.memory_space<vmem>>, vector<8x32xf32>
    %c0_3 = arith.constant 0 : index
    %c0_4 = arith.constant 0 : index
    %2 = vector.load %arg2[%c0_3, %c0_4] : memref<32x128xf32, #tpu.memory_space<vmem>>, vector<32x128xf32>
    %cst = arith.constant dense<0.000000e+00> : vector<8x128xf32>
    %3 = tpu.matmul %1, %2, %cst {dimension_numbers = #tpu.dot_dimension_numbers<[1], [0], [0], [1], [0, 0, 1, 1], [], []>} : vector<8x32xf32>, vector<32x128xf32>, vector<8x128xf32> -> vector<8x128xf32>
    %4 = vector.extract_strided_slice %0 {offsets = [0, 0], sizes = [1, 128], strides = [1, 1]} : vector<3x128xf32> to vector<1x128xf32>
    %5 = vector.broadcast %4 : vector<1x128xf32> to vector<8x128xf32>
    %6 = arith.addf %3, %5 : vector<8x128xf32>
    %cst_5 = arith.constant 0.000000e+00 : f32
    %7 = vector.broadcast %cst_5 : f32 to vector<8x128xf32>
    %8 = arith.maximumf %6, %7 : vector<8x128xf32>
    %c0_6 = arith.constant 0 : index
    %c0_7 = arith.constant 0 : index
    %9 = vector.load %arg3[%c0_6, %c0_7] : memref<128x128xf32, #tpu.memory_space<vmem>>, vector<128x128xf32>
    %cst_8 = arith.constant dense<0.000000e+00> : vector<8x128xf32>
    %10 = tpu.matmul %8, %9, %cst_8 {dimension_numbers = #tpu.dot_dimension_numbers<[1], [0], [0], [1], [0, 0, 1, 1], [], []>} : vector<8x128xf32>, vector<128x128xf32>, vector<8x128xf32> -> vector<8x128xf32>
    %11 = vector.extract_strided_slice %0 {offsets = [1, 0], sizes = [1, 128], strides = [1, 1]} : vector<3x128xf32> to vector<1x128xf32>
    %12 = vector.broadcast %11 : vector<1x128xf32> to vector<8x128xf32>
    %13 = arith.addf %10, %12 : vector<8x128xf32>
    %cst_9 = arith.constant 0.000000e+00 : f32
    %14 = vector.broadcast %cst_9 : f32 to vector<8x128xf32>
    %15 = arith.maximumf %13, %14 : vector<8x128xf32>
    %c0_10 = arith.constant 0 : index
    %c0_11 = arith.constant 0 : index
    %16 = vector.load %arg4[%c0_10, %c0_11] : memref<128x128xf32, #tpu.memory_space<vmem>>, vector<128x128xf32>
    %cst_12 = arith.constant dense<0.000000e+00> : vector<8x128xf32>
    %17 = tpu.matmul %15, %16, %cst_12 {dimension_numbers = #tpu.dot_dimension_numbers<[1], [0], [0], [1], [0, 0, 1, 1], [], []>} : vector<8x128xf32>, vector<128x128xf32>, vector<8x128xf32> -> vector<8x128xf32>
    %18 = vector.extract_strided_slice %0 {offsets = [2, 0], sizes = [1, 128], strides = [1, 1]} : vector<3x128xf32> to vector<1x128xf32>
    %19 = vector.broadcast %18 : vector<1x128xf32> to vector<8x128xf32>
    %20 = arith.addf %17, %19 : vector<8x128xf32>
    %c0_13 = arith.constant 0 : index
    %c0_14 = arith.constant 0 : index
    %21 = vector.load %arg6[%c0_13, %c0_14] : memref<8x128xf32, #tpu.memory_space<vmem>>, vector<8x128xf32>
    tpu.vector_store %arg6[%c0_13, %c0_14], %20 {strides = array<i32>} : memref<8x128xf32, #tpu.memory_space<vmem>>, vector<8x128xf32>,
    return
  }
  func.func @transform_0(%arg0: i32) -> (i32, i32) {
    %c0_i32 = arith.constant 0 : i32
    %c0_i32_0 = arith.constant 0 : i32
    return %arg0, %c0_i32 : i32, i32
  }
  func.func @transform_1(%arg0: i32) -> (i32, i32) {
    %c0_i32 = arith.constant 0 : i32
    %c0_i32_0 = arith.constant 0 : i32
    %c0_i32_1 = arith.constant 0 : i32
    return %c0_i32, %c0_i32_0 : i32, i32
  }
  func.func @transform_2(%arg0: i32) -> (i32, i32) {
    %c0_i32 = arith.constant 0 : i32
    %c0_i32_0 = arith.constant 0 : i32
    %c0_i32_1 = arith.constant 0 : i32
    return %c0_i32, %c0_i32_0 : i32, i32
  }
  func.func @transform_3(%arg0: i32) -> (i32, i32) {
    %c0_i32 = arith.constant 0 : i32
    %c0_i32_0 = arith.constant 0 : i32
    %c0_i32_1 = arith.constant 0 : i32
    return %c0_i32, %c0_i32_0 : i32, i32
  }
  func.func @transform_4(%arg0: i32) -> (i32, i32) {
    %c0_i32 = arith.constant 0 : i32
    %c0_i32_0 = arith.constant 0 : i32
    %c0_i32_1 = arith.constant 0 : i32
    return %c0_i32, %c0_i32_0 : i32, i32
  }
  func.func @transform_5(%arg0: i32) -> (i32, i32) {
    %c0_i32 = arith.constant 0 : i32
    %c0_i32_0 = arith.constant 0 : i32
    return %arg0, %c0_i32 : i32, i32
  }
}

</mosaic_0001>

<bundles_post_ra>
// kernel: _lambda_.1
= control target key start
LH: loop header
LB: loop body
LE: loop exit
PB: predicated region body
PF: predicated region fallthrough
CT: control target
= control target key end

     0   :  { %10 = vsyncpa [#allocation3], 0  ;;  %s707_s0 = inlined_call_operand.vmem [shape: f32[8,32], index: 0, kind: input, shape index: {}]   ;;  %s708_s1 = inlined_call_operand.hbm [shape: f32[32,128], index: 1, kind: input, shape index: {}]   ;;  %s709_s2 = inlined_call_operand.hbm [shape: f32[128,128], index: 2, kind: input, shape index: {}]   ;;  %s710_s3 = inlined_call_operand.hbm [shape: f32[128,128], index: 3, kind: input, shape index: {}]   ;;  %s711_s4 = inlined_call_operand.vmem [shape: f32[3,128], index: 4, kind: input, shape index: {}]   ;;  %s712_s5 = inlined_call_operand.vmem [shape: f32[8,128], index: 5, kind: output, shape index: {}]  }
   0x1   :  { %11 = vsyncpa [#allocation5], 0  ;;  %s587_s18 = smov [#allocation4]   ;;  %s588_s20 = smov [#allocation2]  }
   0x2   :  { %s31_s19 = sshll.u32 %s587_s18, 4  ;;  %s19_s21 = sshll.u32 %s588_s20, 4  ;;  %s32_s19 = int_to_ptr.vmem [resolvable:$true] %s31_s19  ;;  %s625_s21 = int_to_ptr.vmem [resolvable:$true] %s19_s21 }
   0x3   :  { %s517_s24 = scalar_lea.hbm %s709_s2, 2048 }
   0x4   :  { %p518_p0 = scmp.ne.s32.totalorder %s709_s2, %s517_s24  ;;  %p521_p1 = scmp.lt.u32.totalorder %s517_s24, %s709_s2 }
   0x6   :  { %p523_p2 = pnand %p521_p1, %p518_p0 }
   0x8   :  { %526 = shalt.err (!%p523_p2)
}
   0x9   :  { %s527_s29 = scalar_lea.vmem %s32_s19, 2048  ;;  %p532_p4 = scmp.lt.s32.totalorder %s32_s19, %s32_s19 }
   0xa   :  { %p528_p3 = scmp.ne.s32.totalorder %s32_s19, %s527_s29  ;;  %p533_p5 = scmp.lt.s32.totalorder %s527_s29, %s527_s29 }
   0xc   :  { %p534_p6 = por %p533_p5, %p532_p4 }
   0xe   :  { %p535_p7 = pnand %p534_p6, %p528_p3 }
  0x10   :  { %538 = shalt.err (!%p535_p7)
}
  0x11   :  { %s589_s30 = smov 128   ;;  %s590_s6 = smov 8  }
  0x12   :  { %37 = dma.hbm_to_vmem [thread:$0]  %s709_s2, 2048, %s32_s19, [#allocation5], %s589_s30, %s589_s30, %s590_s6  }
  0x13   :  { %s539_s11 = scalar_lea.hbm %s708_s1, 512 }
  0x14   :  { %p540_p8 = scmp.ne.s32.totalorder %s708_s1, %s539_s11  ;;  %p543_p9 = scmp.lt.u32.totalorder %s539_s11, %s708_s1 }
  0x16   :  { %p545_p10 = pnand %p543_p9, %p540_p8 }
  0x18   :  { %548 = shalt.err (!%p545_p10)
}
  0x19   :  { %s549_s16 = scalar_lea.vmem %s625_s21, 512  ;;  %p554_p12 = scmp.lt.s32.totalorder %s625_s21, %s625_s21 }
  0x1a   :  { %p550_p11 = scmp.ne.s32.totalorder %s625_s21, %s549_s16  ;;  %p555_p13 = scmp.lt.s32.totalorder %s549_s16, %s549_s16 }
  0x1c   :  { %p556_p0 = por %p555_p13, %p554_p12 }
  0x1e   :  { %p557_p1 = pnand %p556_p0, %p550_p11 }
  0x20   :  { %560 = shalt.err (!%p557_p1)
}
  0x21   :  { %25 = dma.hbm_to_vmem [thread:$0]  %s708_s1, 512, %s625_s21, [#allocation3], %s589_s30, %s589_s30, %s590_s6  }
  0x22   :  { %s591_s18 = smov [#allocation6]   ;;  %s561_s23 = scalar_lea.hbm %s710_s3, 2048 }
  0x23   :  { %s43_s19 = sshll.u32 %s591_s18, 4  ;;  %p562_p2 = scmp.ne.s32.totalorder %s710_s3, %s561_s23  ;;  %s44_s19 = int_to_ptr.vmem [resolvable:$true] %s43_s19 }
  0x24   :  { %p565_p3 = scmp.lt.u32.totalorder %s561_s23, %s710_s3 }
  0x26   :  { %p567_p4 = pnand %p565_p3, %p562_p2 }
  0x28   :  { %570 = shalt.err (!%p567_p4)
}
  0x29   :  { %s571_s28 = scalar_lea.vmem %s44_s19, 2048  ;;  %p576_p6 = scmp.lt.s32.totalorder %s44_s19, %s44_s19 }
  0x2a   :  { %p572_p5 = scmp.ne.s32.totalorder %s44_s19, %s571_s28  ;;  %p577_p7 = scmp.lt.s32.totalorder %s571_s28, %s571_s28 }
  0x2c   :  { %p578_p8 = por %p577_p7, %p576_p6 }
  0x2e   :  { %p579_p9 = pnand %p578_p8, %p572_p5 }
  0x30   :  { %582 = shalt.err (!%p579_p9)
}
  0x31   :  { %49 = dma.hbm_to_vmem [thread:$0]  %s710_s3, 2048, %s44_s19, [#allocation5], %s589_s30, %s589_s30, %s590_s6  }
  0x32   :  { %583 = dma.done.wait [#allocation3], 512  }
  0x33   :  { %584 = vsyncadd [#allocation3], 4294966784 }
  0x34   :  { %585 = dma.done.wait [#allocation5], 4096  }
  0x35   :  { %586 = vsyncadd [#allocation5], 4294963200  ;;  %v592_v0 = vmov 0.0|0.0   ;;  %vm593_vm0 = vmmov 0   ;;  %v594_v1 = vmov 0.0   ;;  %v63_v2 = vld [vmem:[#allocation2] sm:$0xff]  ;;  %v67_v54 = vlaneseq }
  0x36   :  { %455 = vmatprep.subr.bf16.mxu0 %v592_v0  ;;  %382 = vmatprep.mubr.msk.f32.mxu0 %vm593_vm0, %v594_v1  ;;  %v64_v3 = vld [vmem:[#allocation2 + $0x8] sm:$0xff]  ;;  %v65_v4 = vld [vmem:[#allocation2 + $0x10] sm:$0xff]  ;;  %v66_v6 = vld [vmem:[#allocation2 + $0x18] sm:$0xff]  ;;  %vm71_vm1 = vcmask 261120  }
  0x37   :  { %461 = vmatprep.subr.bf16.mxu1 %v592_v0  ;;  %417 = vmatprep.mubr.msk.f32.mxu1 %vm593_vm0, %v594_v1  ;;  %v456_v5 = vpack.c.bf16 %v64_v3, %v63_v2  ;;  %v146_v7 = vld [vmem:[#allocation4] sm:$0xff]  ;;  %v147_v8 = vld [vmem:[#allocation4 + $0x8] sm:$0xff]  ;;  %v148_v9 = vld [vmem:[#allocation4 + $0x10] sm:$0xff]  ;;  %v459_v11 = vpack.c.bf16 %v66_v6, %v65_v4  ;;  %v68_v55 = vshrl.u32 %v67_v54, 7 }
  0x38   :  { %v149_v10 = vld [vmem:[#allocation4 + $0x18] sm:$0xff]  ;;  %v462_v12 = vpack.c.bf16 %v147_v8, %v146_v7  ;;  %v150_v14 = vld [vmem:[#allocation4 + $0x20] sm:$0xff]  ;;  %v151_v15 = vld [vmem:[#allocation4 + $0x28] sm:$0xff] }
  0x39   :  { %457 = vmatpush3.bf16.msra.mxu0 %v456_v5  ;;  %v465_v13 = vpack.c.bf16 %v149_v10, %v148_v9  ;;  %v62_v16 = vld [vmem:[%s707_s0] sm:$0xff]  ;;  %v468_v17 = vpack.c.bf16 %v151_v15, %v150_v14  ;;  %v152_v18 = vld [vmem:[#allocation4 + $0x30] sm:$0xff]  ;;  %v153_v19 = vld [vmem:[#allocation4 + $0x38] sm:$0xff]  ;;  %v69_v56 = vsub.s32 0, %v68_v55  ;;  %v164_v3 = vsub.s32 1, %v68_v55 }
  0x3a   :  { %458 = vmatprep.subr.bf16.mxu0 %v592_v0  ;;  %463 = vmatpush3.bf16.msra.mxu1 %v462_v12  ;;  %v471_v20 = vpack.c.bf16 %v153_v19, %v152_v18  ;;  %v154_v21 = vld [vmem:[#allocation4 + $0x40] sm:$0xff]  ;;  %v155_v22 = vld [vmem:[#allocation4 + $0x48] sm:$0xff]  ;;  %v156_v24 = vld [vmem:[#allocation4 + $0x50] sm:$0xff]  ;;  %v255_v8 = vsub.s32 2, %v68_v55 }
  0x3b   :  { %464 = vmatprep.subr.bf16.mxu1 %v592_v0  ;;  %v474_v23 = vpack.c.bf16 %v155_v22, %v154_v21  ;;  %v157_v25 = vld [vmem:[#allocation4 + $0x58] sm:$0xff]  ;;  %v158_v27 = vld [vmem:[#allocation4 + $0x60] sm:$0xff]  ;;  %v159_v28 = vld [vmem:[#allocation4 + $0x68] sm:$0xff] }
  0x3c   :  { %v477_v26 = vpack.c.bf16 %v157_v25, %v156_v24  ;;  %v480_v29 = vpack.c.bf16 %v159_v28, %v158_v27  ;;  %v160_v30 = vld [vmem:[#allocation4 + $0x70] sm:$0xff]  ;;  %v161_v31 = vld [vmem:[#allocation4 + $0x78] sm:$0xff]  ;;  %v237_v33 = vld [vmem:[#allocation6] sm:$0xff] }
  0x3d   :  { %460 = vmatpush3.bf16.msra.mxu0 %v459_v11  ;;  %v483_v32 = vpack.c.bf16 %v161_v31, %v160_v30  ;;  %v238_v34 = vld [vmem:[#allocation6 + $0x8] sm:$0xff]  ;;  %v239_v35 = vld [vmem:[#allocation6 + $0x10] sm:$0xff]  ;;  %v240_v37 = vld [vmem:[#allocation6 + $0x18] sm:$0xff] }
  0x3e   :  { %485 = vmatprep.subr.bf16.mxu0 %v592_v0  ;;  %466 = vmatpush3.bf16.msra.mxu1 %v465_v13  ;;  %v486_v36 = vpack.c.bf16 %v238_v34, %v237_v33  ;;  %v489_v38 = vpack.c.bf16 %v240_v37, %v239_v35  ;;  %v241_v39 = vld [vmem:[#allocation6 + $0x20] sm:$0xff]  ;;  %v242_v40 = vld [vmem:[#allocation6 + $0x28] sm:$0xff]  ;;  %v243_v42 = vld [vmem:[#allocation6 + $0x30] sm:$0xff] }
  0x3f   :  { %467 = vmatprep.subr.bf16.mxu1 %v592_v0  ;;  %v492_v41 = vpack.c.bf16 %v242_v40, %v241_v39  ;;  %v244_v43 = vld [vmem:[#allocation6 + $0x38] sm:$0xff]  ;;  %v245_v45 = vld [vmem:[#allocation6 + $0x40] sm:$0xff]  ;;  %v246_v46 = vld [vmem:[#allocation6 + $0x48] sm:$0xff] }
  0x40   :  { %383 = vmatmul.mubr.msk.f32.vlgmr.msra.gmra.mrb[0].mxu0 %vm71_vm1, %v62_v16  ;;  %v495_v44 = vpack.c.bf16 %v244_v43, %v243_v42  ;;  %v498_v47 = vpack.c.bf16 %v246_v46, %v245_v45  ;;  %v247_v48 = vld [vmem:[#allocation6 + $0x50] sm:$0xff]  ;;  %v248_v49 = vld [vmem:[#allocation6 + $0x58] sm:$0xff]  ;;  %v249_v51 = vld [vmem:[#allocation6 + $0x60] sm:$0xff] }
  0x41   :  { %452 = vmatprep.mubr.msk.f32.mxu0 %vm593_vm0, %v594_v1  ;;  %487 = vmatpush3.bf16.msra.mxu0 %v486_v36  ;;  %v501_v50 = vpack.c.bf16 %v248_v49, %v247_v48  ;;  %v250_v52 = vld [vmem:[#allocation6 + $0x68] sm:$0xff]  ;;  %v61_v57 = vld [vmem:[%s711_s4] sm:$0x7]  ;;  %v251_v63 = vld [vmem:[#allocation6 + $0x70] sm:$0xff] }
  0x42   :  { %469 = vmatpush3.bf16.msra.mxu1 %v468_v17  ;;  %488 = vmatprep.subr.bf16.mxu0 %v592_v0  ;;  %v504_v53 = vpack.c.bf16 %v250_v52, %v249_v51  ;;  %v70_v58 = vrot.slane %v61_v57, %v69_v56  ;;  %v252_v1 = vld [vmem:[#allocation6 + $0x78] sm:$0xff]  ;;  %v165_v4 = vrot.slane %v61_v57, %v164_v3 }
  0x43   :  { %470 = vmatprep.subr.bf16.mxu1 %v592_v0  ;;  %v507_v2 = vpack.c.bf16 %v252_v1, %v251_v63  ;;  %v256_v9 = vrot.slane %v61_v57, %v255_v8 }
  0x45   :  { %490 = vmatpush3.bf16.msra.mxu0 %v489_v38 }
  0x46   :  { %472 = vmatpush3.bf16.msra.mxu1 %v471_v20  ;;  %491 = vmatprep.subr.bf16.mxu0 %v592_v0 }
  0x47   :  { %473 = vmatprep.subr.bf16.mxu1 %v592_v0 }
  0x49   :  { %493 = vmatpush3.bf16.msra.mxu0 %v492_v41 }
  0x4a   :  { %475 = vmatpush3.bf16.msra.mxu1 %v474_v23  ;;  %494 = vmatprep.subr.bf16.mxu0 %v592_v0 }
  0x4b   :  { %476 = vmatprep.subr.bf16.mxu1 %v592_v0 }
  0x4d   :  { %496 = vmatpush3.bf16.msra.mxu0 %v495_v44 }
  0x4e   :  { %478 = vmatpush3.bf16.msra.mxu1 %v477_v26  ;;  %497 = vmatprep.subr.bf16.mxu0 %v592_v0 }
  0x4f   :  { %479 = vmatprep.subr.bf16.mxu1 %v592_v0 }
  0x51   :  { %499 = vmatpush3.bf16.msra.mxu0 %v498_v47 }
  0x52   :  { %481 = vmatpush3.bf16.msra.mxu1 %v480_v29  ;;  %500 = vmatprep.subr.bf16.mxu0 %v592_v0 }
  0x53   :  { %482 = vmatprep.subr.bf16.mxu1 %v592_v0 }
  0x55   :  { %502 = vmatpush3.bf16.msra.mxu0 %v501_v50 }
  0x56   :  { %484 = vmatpush3.bf16.msra.mxu1 %v483_v32  ;;  %503 = vmatprep.subr.bf16.mxu0 %v592_v0 }
  0x59   :  { %505 = vmatpush3.bf16.msra.mxu0 %v504_v53 }
  0x5a   :  { %506 = vmatprep.subr.bf16.mxu0 %v592_v0 }
  0x5d   :  { %508 = vmatpush3.bf16.msra.mxu0 %v507_v2 }
 0x113   :  { %v141_v59 = vpop.f32.mrb[0].mxu0 }
 0x114   :  { %v142_v60 = vadd.f32 %v141_v59, %v70_v58  ;;  %v384_v61 = vpop.f32.mrb[1].mxu0 }
 0x116   :  { %v145_v62 = vmax.f32 %v142_v60, 0.0 }
 0x118   :  { %418 = vmatmul.mubr.f32.vlgmr.msra.gmra.mrb[0].mxu1 %v145_v62 }
 0x1eb   :  { %v232_v0 = vpop.f32.mrb[0].mxu1 }
 0x1ec   :  { %v233_v5 = vadd.f32 %v232_v0, %v165_v4  ;;  %v419_v6 = vpop.f32.mrb[1].mxu1 }
 0x1ee   :  { %v236_v7 = vmax.f32 %v233_v5, 0.0 }
 0x1f0   :  { %453 = vmatmul.mubr.f32.vlgmr.msra.gmra.mrb[2].mxu0 %v236_v7 }
 0x2c3   :  { %v323_v10 = vpop.f32.mrb[2].mxu0 }
 0x2c4   :  { %v324_v11 = vadd.f32 %v323_v10, %v256_v9  ;;  %v454_v12 = vpop.f32.mrb[3].mxu0 }
 0x2c6   :  { %327 = vst [vmem:[%s712_s5] sm:$0xff] %v324_v11 }
 0x2c7   :  { %332 = vsyncpa [#allocation3], 1 }
 0x2c8   :  { %333 = vsyncpa [#allocation5], 1 }

</bundles_post_ra>
